<compile_context>
chip_gen: v7x
topology: tpu7x:2x2x1
jax: 0.10.0
libtpu: 0.0.40
codegen_flags: <defaults>
</compile_context>

<pallas_src>
import jax
import jax.numpy as jnp
from jax.experimental import pallas as pl
from jax.experimental.pallas import tpu as pltpu


def am3_kernel(im_ref, text_ref,
               wim_ref, bim_ref,
               wg1_ref, bg1_ref, wg2_ref, bg2_ref,
               wh1_ref, bh1_ref, wh2t_ref, bh2_ref,
               im_out_ref, text_out_ref, lamda_out_ref):
    f32 = jnp.float32

    # image encoder: Linear(im_emb_dim -> prototype_dim)
    im_emb = jnp.dot(im_ref[...], wim_ref[...],
                     preferred_element_type=f32) + bim_ref[...]
    im_out_ref[...] = im_emb

    # g: Linear -> ReLU -> (Dropout: identity in eval) -> Linear
    t1 = jnp.dot(text_ref[...], wg1_ref[...],
                 preferred_element_type=f32) + bg1_ref[...]
    t1 = jnp.maximum(t1, 0.0)
    text_emb = jnp.dot(t1.astype(wg2_ref.dtype), wg2_ref[...],
                       preferred_element_type=f32) + bg2_ref[...]
    text_out_ref[...] = text_emb

    # h: Linear -> ReLU -> (Dropout: identity) -> Linear(hid -> 1), then sigmoid.
    h1 = jnp.dot(text_emb.astype(wh1_ref.dtype), wh1_ref[...],
                 preferred_element_type=f32) + bh1_ref[...]
    h1 = jnp.maximum(h1, 0.0)
    # N=1 matmul replaced by a lane reduction (VPU mul + XLU reduce); bias is an SMEM scalar.
    logit = jnp.sum(h1 * wh2t_ref[...], axis=-1, keepdims=True) + bh2_ref[0, 0]
    lam = jax.nn.sigmoid(logit)                     # EUP transcendental, separate slot
    # Lane-dense writeback: broadcast the per-row scalar across all 128 lanes (unmasked vst).
    lamda_out_ref[...] = jnp.broadcast_to(lam, lamda_out_ref.shape)


def _round_up(x, m):
    return ((x + m - 1) // m) * m


def _pad2(x, r, c):
    pr, pc = r - x.shape[0], c - x.shape[1]
    if pr or pc:
        x = jnp.pad(x, ((0, pr), (0, pc)))
    return x


def am3_forward(im, text, params, tile_rows=512):
    """im: (B, NK, im_emb_dim), text: (B, NK, text_emb_dim) precomputed encodings."""
    B, NK, im_dim = im.shape
    _, _, txt_dim = text.shape
    hid = params["wg1"].shape[1]
    P = params["wg2"].shape[1]
    rows = B * NK

    bf16, f32 = jnp.bfloat16, jnp.float32

    # Lane-aligned (multiple-of-128) feature dims.
    IMP = _round_up(im_dim, 128)
    TXP = _round_up(txt_dim, 128)
    HP = _round_up(hid, 128)
    PP = _round_up(P, 128)
    LAM = 128  # lane-dense lamda slab

    # Row tile: sublane-aligned, sized to minimize padding waste at <= tile_rows.
    n_tiles = max(1, pl.cdiv(rows, tile_rows))
    TILE = _round_up(pl.cdiv(rows, n_tiles), 8)
    rows_pad = _round_up(rows, TILE)
    grid = (rows_pad // TILE,)

    # Activations: bf16, zero-padded (zeros contribute nothing through the matmuls).
    im2 = _pad2(im.reshape(rows, im_dim).astype(bf16), rows_pad, IMP)
    txt2 = _pad2(text.reshape(rows, txt_dim).astype(bf16), rows_pad, TXP)

    # Weights bf16 (MXU path); biases + tiny head weight stay f32 (VPU/EUP math in f32).
    wim_p = _pad2(params["wim"].astype(bf16), IMP, PP)
    bim_p = _pad2(params["bim"].astype(f32), 1, PP)
    wg1_p = _pad2(params["wg1"].astype(bf16), TXP, HP)
    bg1_p = _pad2(params["bg1"].astype(f32), 1, HP)
    wg2_p = _pad2(params["wg2"].astype(bf16), HP, PP)
    bg2_p = _pad2(params["bg2"].astype(f32), 1, PP)
    wh1_p = _pad2(params["wh1"].astype(bf16), PP, HP)
    bh1_p = _pad2(params["bh1"].astype(f32), 1, HP)
    wh2t_p = _pad2(params["wh2"].astype(f32).T, 1, HP)       # (1, HP) row for the reduce
    bh2_p = params["bh2"].astype(f32).reshape(1, 1)           # scalar -> SMEM

    rows_map = lambda i: (i, 0)
    const_map = lambda i: (0, 0)

    in_specs = [
        pl.BlockSpec((TILE, IMP), rows_map),                  # im tile
        pl.BlockSpec((TILE, TXP), rows_map),                  # text tile
        pl.BlockSpec((IMP, PP), const_map),                   # wim  (resident)
        pl.BlockSpec((1, PP), const_map),                     # bim
        pl.BlockSpec((TXP, HP), const_map),                   # wg1
        pl.BlockSpec((1, HP), const_map),                     # bg1
        pl.BlockSpec((HP, PP), const_map),                    # wg2
        pl.BlockSpec((1, PP), const_map),                     # bg2
        pl.BlockSpec((PP, HP), const_map),                    # wh1
        pl.BlockSpec((1, HP), const_map),                     # bh1
        pl.BlockSpec((1, HP), const_map),                     # wh2 (as a row, f32)
        pl.BlockSpec(memory_space=pltpu.SMEM),                # bh2 scalar
    ]
    out_specs = (
        pl.BlockSpec((TILE, PP), rows_map),
        pl.BlockSpec((TILE, PP), rows_map),
        pl.BlockSpec((TILE, LAM), rows_map),
    )
    out_shapes = (
        jax.ShapeDtypeStruct((rows_pad, PP), f32),            # im embeddings
        jax.ShapeDtypeStruct((rows_pad, PP), f32),            # text embeddings
        jax.ShapeDtypeStruct((rows_pad, LAM), f32),           # lamda (lane-dense)
    )

    flops = 2 * rows_pad * (IMP * PP + TXP * HP + HP * PP + PP * HP + HP)
    bytes_accessed = int(
        im2.size * 2 + txt2.size * 2
        + (wim_p.size + wg1_p.size + wg2_p.size + wh1_p.size) * 2
        + (bim_p.size + bg1_p.size + bg2_p.size + bh1_p.size + wh2t_p.size + 1) * 4
        + (2 * rows_pad * PP + rows_pad * LAM) * 4)

    im_emb, text_emb, lamda = pl.pallas_call(
        am3_kernel,
        out_shape=out_shapes,
        grid=grid,
        in_specs=in_specs,
        out_specs=out_specs,
        compiler_params=pltpu.CompilerParams(
            dimension_semantics=("parallel",),
            vmem_limit_bytes=32 * 1024 * 1024,
        ),
        cost_estimate=pl.CostEstimate(
            flops=flops, transcendentals=rows_pad, bytes_accessed=bytes_accessed),
    )(im2, txt2,
      wim_p, bim_p, wg1_p, bg1_p, wg2_p, bg2_p,
      wh1_p, bh1_p, wh2t_p, bh2_p)

    return (im_emb[:rows, :P].reshape(B, NK, P),
            text_emb[:rows, :P].reshape(B, NK, P),
            lamda[:rows, :1].reshape(B, NK, 1))


def init_linear(key, fan_in, fan_out):
    """PyTorch-style uniform(-1/sqrt(fan_in), 1/sqrt(fan_in)); weight stored (in, out)."""
    kw, kb = jax.random.split(key)
    bound = 1.0 / jnp.sqrt(jnp.float32(fan_in))
    w = jax.random.uniform(kw, (fan_in, fan_out), jnp.float32, -bound, bound)
    b = jax.random.uniform(kb, (1, fan_out), jnp.float32, -bound, bound)
    return w, b


if __name__ == "__main__":
    # Small config consistent with AM3.__init__ shapes
    B, NK = 2, 8
    im_emb_dim = 32       # stands for the precomputed image-embedding dim
    text_emb_dim = 32     # stands for 300
    text_hid_dim = 32     # stands for 300
    prototype_dim = 64    # stands for 512

    key = jax.random.PRNGKey(0)
    k_im, k_txt, k1, k2, k3, k4, k5 = jax.random.split(key, 7)

    im = jax.random.normal(k_im, (B, NK, im_emb_dim), jnp.float32)
    text = jax.random.normal(k_txt, (B, NK, text_emb_dim), jnp.float32)

    wim, bim = init_linear(k1, im_emb_dim, prototype_dim)
    wg1, bg1 = init_linear(k2, text_emb_dim, text_hid_dim)
    wg2, bg2 = init_linear(k3, text_hid_dim, prototype_dim)
    wh1, bh1 = init_linear(k4, prototype_dim, text_hid_dim)
    wh2, bh2 = init_linear(k5, text_hid_dim, 1)

    params = dict(wim=wim, bim=bim, wg1=wg1, bg1=bg1, wg2=wg2, bg2=bg2,
                  wh1=wh1, bh1=bh1, wh2=wh2, bh2=bh2)

    im_emb, text_emb, lamda = am3_forward(im, text, params)
    jax.block_until_ready((im_emb, text_emb, lamda))

    # Plain-JAX reference mirroring the kernel numerics (bf16 matmuls, f32 accumulation,
    # f32 elementwise, f32 final head).
    rows = B * NK
    imb = im.reshape(rows, im_emb_dim).astype(jnp.bfloat16)
    txtb = text.reshape(rows, text_emb_dim).astype(jnp.bfloat16)
    ref_im = jnp.dot(imb, wim.astype(jnp.bfloat16),
                     preferred_element_type=jnp.float32) + bim
    t1 = jnp.maximum(jnp.dot(txtb, wg1.astype(jnp.bfloat16),
                             preferred_element_type=jnp.float32) + bg1, 0.0)
    ref_txt = jnp.dot(t1.astype(jnp.bfloat16), wg2.astype(jnp.bfloat16),
                      preferred_element_type=jnp.float32) + bg2
    h1 = jnp.maximum(jnp.dot(ref_txt.astype(jnp.bfloat16), wh1.astype(jnp.bfloat16),
                             preferred_element_type=jnp.float32) + bh1, 0.0)
    ref_lam = jax.nn.sigmoid(h1 @ wh2 + bh2)

    assert jnp.allclose(im_emb.reshape(rows, prototype_dim), ref_im,
                        atol=2e-3, rtol=2e-3)
    assert jnp.allclose(text_emb.reshape(rows, prototype_dim), ref_txt,
                        atol=2e-3, rtol=2e-3)
    assert jnp.allclose(lamda.reshape(rows, 1), ref_lam, atol=2e-3, rtol=2e-3)

    print("KERNEL_OK")
</pallas_src>

<mosaic_0001>
module attributes {stable_mosaic.version = 11 : i64} {
  func.func @am3_kernel(%arg0: i32, %arg1: memref<16x128xbf16, #tpu.memory_space<vmem>>, %arg2: memref<16x128xbf16, #tpu.memory_space<vmem>>, %arg3: memref<128x128xbf16, #tpu.memory_space<vmem>>, %arg4: memref<1x128xf32, #tpu.memory_space<vmem>>, %arg5: memref<128x128xbf16, #tpu.memory_space<vmem>>, %arg6: memref<1x128xf32, #tpu.memory_space<vmem>>, %arg7: memref<128x128xbf16, #tpu.memory_space<vmem>>, %arg8: memref<1x128xf32, #tpu.memory_space<vmem>>, %arg9: memref<128x128xbf16, #tpu.memory_space<vmem>>, %arg10: memref<1x128xf32, #tpu.memory_space<vmem>>, %arg11: memref<1x128xf32, #tpu.memory_space<vmem>>, %arg12: memref<1x1xf32, #tpu.memory_space<smem>>, %arg13: memref<16x128xf32, #tpu.memory_space<vmem>>, %arg14: memref<16x128xf32, #tpu.memory_space<vmem>>, %arg15: memref<16x128xf32, #tpu.memory_space<vmem>>) attributes {dimension_semantics = [#tpu.dimension_semantics<parallel>], iteration_bounds = array<i64: 1>, scalar_prefetch = 0 : i64, scratch_operands = 0 : i64, tpu.core_type = #tpu.core_type<tc>, window_params = [{transform_indices = @transform_0, window_bounds = array<i64: 16, 128>}, {transform_indices = @transform_1, window_bounds = array<i64: 16, 128>}, {pipeline_mode = #tpu.pipeline_mode<synchronous>, transform_indices = @transform_2, window_bounds = array<i64: 128, 128>}, {pipeline_mode = #tpu.pipeline_mode<synchronous>, transform_indices = @transform_3, window_bounds = array<i64: 1, 128>}, {pipeline_mode = #tpu.pipeline_mode<synchronous>, transform_indices = @transform_4, window_bounds = array<i64: 128, 128>}, {pipeline_mode = #tpu.pipeline_mode<synchronous>, transform_indices = @transform_5, window_bounds = array<i64: 1, 128>}, {pipeline_mode = #tpu.pipeline_mode<synchronous>, transform_indices = @transform_6, window_bounds = array<i64: 128, 128>}, {pipeline_mode = #tpu.pipeline_mode<synchronous>, transform_indices = @transform_7, window_bounds = array<i64: 1, 128>}, {pipeline_mode = #tpu.pipeline_mode<synchronous>, transform_indices = @transform_8, window_bounds = array<i64: 128, 128>}, {pipeline_mode = #tpu.pipeline_mode<synchronous>, transform_indices = @transform_9, window_bounds = array<i64: 1, 128>}, {pipeline_mode = #tpu.pipeline_mode<synchronous>, transform_indices = @transform_10, window_bounds = array<i64: 1, 128>}, {transform_indices = @transform_11, window_bounds = array<i64: 1, 1>}, {transform_indices = @transform_12, window_bounds = array<i64: 16, 128>}, {transform_indices = @transform_13, window_bounds = array<i64: 16, 128>}, {transform_indices = @transform_14, window_bounds = array<i64: 16, 128>}]} {
    %c0 = arith.constant 0 : index
    %c0_0 = arith.constant 0 : index
    %0 = vector.load %arg1[%c0, %c0_0] : memref<16x128xbf16, #tpu.memory_space<vmem>>, vector<16x128xbf16>
    %c0_1 = arith.constant 0 : index
    %c0_2 = arith.constant 0 : index
    %1 = vector.load %arg3[%c0_1, %c0_2] : memref<128x128xbf16, #tpu.memory_space<vmem>>, vector<128x128xbf16>
    %cst = arith.constant dense<0.000000e+00> : vector<16x128xf32>
    %2 = tpu.matmul %0, %1, %cst {dimension_numbers = #tpu.dot_dimension_numbers<[1], [0], [0], [1], [0, 0, 1, 1], [], []>} : vector<16x128xbf16>, vector<128x128xbf16>, vector<16x128xf32> -> vector<16x128xf32>
    %c0_3 = arith.constant 0 : index
    %c0_4 = arith.constant 0 : index
    %3 = vector.load %arg4[%c0_3, %c0_4] : memref<1x128xf32, #tpu.memory_space<vmem>>, vector<1x128xf32>
    %4 = vector.broadcast %3 : vector<1x128xf32> to vector<16x128xf32>
    %5 = arith.addf %2, %4 : vector<16x128xf32>
    %c0_5 = arith.constant 0 : index
    %c0_6 = arith.constant 0 : index
    %6 = vector.load %arg13[%c0_5, %c0_6] : memref<16x128xf32, #tpu.memory_space<vmem>>, vector<16x128xf32>
    tpu.vector_store %arg13[%c0_5, %c0_6], %5 {strides = array<i32>} : memref<16x128xf32, #tpu.memory_space<vmem>>, vector<16x128xf32>,
    %c0_7 = arith.constant 0 : index
    %c0_8 = arith.constant 0 : index
    %7 = vector.load %arg2[%c0_7, %c0_8] : memref<16x128xbf16, #tpu.memory_space<vmem>>, vector<16x128xbf16>
    %c0_9 = arith.constant 0 : index
    %c0_10 = arith.constant 0 : index
    %8 = vector.load %arg5[%c0_9, %c0_10] : memref<128x128xbf16, #tpu.memory_space<vmem>>, vector<128x128xbf16>
    %cst_11 = arith.constant dense<0.000000e+00> : vector<16x128xf32>
    %9 = tpu.matmul %7, %8, %cst_11 {dimension_numbers = #tpu.dot_dimension_numbers<[1], [0], [0], [1], [0, 0, 1, 1], [], []>} : vector<16x128xbf16>, vector<128x128xbf16>, vector<16x128xf32> -> vector<16x128xf32>
    %c0_12 = arith.constant 0 : index
    %c0_13 = arith.constant 0 : index
    %10 = vector.load %arg6[%c0_12, %c0_13] : memref<1x128xf32, #tpu.memory_space<vmem>>, vector<1x128xf32>
    %11 = vector.broadcast %10 : vector<1x128xf32> to vector<16x128xf32>
    %12 = arith.addf %9, %11 : vector<16x128xf32>
    %cst_14 = arith.constant 0.000000e+00 : f32
    %13 = vector.broadcast %cst_14 : f32 to vector<16x128xf32>
    %14 = arith.maximumf %12, %13 : vector<16x128xf32>
    %15 = arith.truncf %14 : vector<16x128xf32> to vector<16x128xbf16>
    %c0_15 = arith.constant 0 : index
    %c0_16 = arith.constant 0 : index
    %16 = vector.load %arg7[%c0_15, %c0_16] : memref<128x128xbf16, #tpu.memory_space<vmem>>, vector<128x128xbf16>
    %cst_17 = arith.constant dense<0.000000e+00> : vector<16x128xf32>
    %17 = tpu.matmul %15, %16, %cst_17 {dimension_numbers = #tpu.dot_dimension_numbers<[1], [0], [0], [1], [0, 0, 1, 1], [], []>} : vector<16x128xbf16>, vector<128x128xbf16>, vector<16x128xf32> -> vector<16x128xf32>
    %c0_18 = arith.constant 0 : index
    %c0_19 = arith.constant 0 : index
    %18 = vector.load %arg8[%c0_18, %c0_19] : memref<1x128xf32, #tpu.memory_space<vmem>>, vector<1x128xf32>
    %19 = vector.broadcast %18 : vector<1x128xf32> to vector<16x128xf32>
    %20 = arith.addf %17, %19 : vector<16x128xf32>
    %c0_20 = arith.constant 0 : index
    %c0_21 = arith.constant 0 : index
    %21 = vector.load %arg14[%c0_20, %c0_21] : memref<16x128xf32, #tpu.memory_space<vmem>>, vector<16x128xf32>
    tpu.vector_store %arg14[%c0_20, %c0_21], %20 {strides = array<i32>} : memref<16x128xf32, #tpu.memory_space<vmem>>, vector<16x128xf32>,
    %22 = arith.truncf %20 : vector<16x128xf32> to vector<16x128xbf16>
    %c0_22 = arith.constant 0 : index
    %c0_23 = arith.constant 0 : index
    %23 = vector.load %arg9[%c0_22, %c0_23] : memref<128x128xbf16, #tpu.memory_space<vmem>>, vector<128x128xbf16>
    %cst_24 = arith.constant dense<0.000000e+00> : vector<16x128xf32>
    %24 = tpu.matmul %22, %23, %cst_24 {dimension_numbers = #tpu.dot_dimension_numbers<[1], [0], [0], [1], [0, 0, 1, 1], [], []>} : vector<16x128xbf16>, vector<128x128xbf16>, vector<16x128xf32> -> vector<16x128xf32>
    %c0_25 = arith.constant 0 : index
    %c0_26 = arith.constant 0 : index
    %25 = vector.load %arg10[%c0_25, %c0_26] : memref<1x128xf32, #tpu.memory_space<vmem>>, vector<1x128xf32>
    %26 = vector.broadcast %25 : vector<1x128xf32> to vector<16x128xf32>
    %27 = arith.addf %24, %26 : vector<16x128xf32>
    %cst_27 = arith.constant 0.000000e+00 : f32
    %28 = vector.broadcast %cst_27 : f32 to vector<16x128xf32>
    %29 = arith.maximumf %27, %28 : vector<16x128xf32>
    %c0_28 = arith.constant 0 : index
    %c0_29 = arith.constant 0 : index
    %30 = vector.load %arg11[%c0_28, %c0_29] : memref<1x128xf32, #tpu.memory_space<vmem>>, vector<1x128xf32>
    %31 = vector.broadcast %30 : vector<1x128xf32> to vector<16x128xf32>
    %32 = arith.mulf %29, %31 : vector<16x128xf32>
    %cst_30 = arith.constant dense<0.000000e+00> : vector<16xf32>
    %33 = vector.multi_reduction <add>, %32, %cst_30 [1] : vector<16x128xf32> to vector<16xf32>
    %34 = vector.shape_cast %33 : vector<16xf32> to vector<16x1xf32>
    %c0_31 = arith.constant 0 : index
    %c0_32 = arith.constant 0 : index
    %35 = memref.load %arg12[%c0_31, %c0_32] : memref<1x1xf32, #tpu.memory_space<smem>>
    %36 = vector.broadcast %35 : f32 to vector<16x1xf32>
    %37 = arith.addf %34, %36 : vector<16x1xf32>
    %38 = arith.negf %37 : vector<16x1xf32>
    %39 = math.exp %38 : vector<16x1xf32>
    %cst_33 = arith.constant 1.000000e+00 : f32
    %40 = vector.broadcast %cst_33 : f32 to vector<16x1xf32>
    %41 = arith.addf %40, %39 : vector<16x1xf32>
    %42 = arith.divf %40, %41 : vector<16x1xf32>
    %43 = vector.shape_cast %42 : vector<16x1xf32> to vector<16x1xf32>
    %44 = vector.broadcast %43 : vector<16x1xf32> to vector<16x128xf32>
    %c0_34 = arith.constant 0 : index
    %c0_35 = arith.constant 0 : index
    %45 = vector.load %arg15[%c0_34, %c0_35] : memref<16x128xf32, #tpu.memory_space<vmem>>, vector<16x128xf32>
    tpu.vector_store %arg15[%c0_34, %c0_35], %44 {strides = array<i32>} : memref<16x128xf32, #tpu.memory_space<vmem>>, vector<16x128xf32>,
    return
  }
  func.func @transform_0(%arg0: i32) -> (i32, i32) {
    %c0_i32 = arith.constant 0 : i32
    %c0_i32_0 = arith.constant 0 : i32
    return %arg0, %c0_i32 : i32, i32
  }
  func.func @transform_1(%arg0: i32) -> (i32, i32) {
    %c0_i32 = arith.constant 0 : i32
    %c0_i32_0 = arith.constant 0 : i32
    return %arg0, %c0_i32 : i32, i32
  }
  func.func @transform_2(%arg0: i32) -> (i32, i32) {
    %c0_i32 = arith.constant 0 : i32
    %c0_i32_0 = arith.constant 0 : i32
    %c0_i32_1 = arith.constant 0 : i32
    return %c0_i32, %c0_i32_0 : i32, i32
  }
  func.func @transform_3(%arg0: i32) -> (i32, i32) {
    %c0_i32 = arith.constant 0 : i32
    %c0_i32_0 = arith.constant 0 : i32
    %c0_i32_1 = arith.constant 0 : i32
    return %c0_i32, %c0_i32_0 : i32, i32
  }
  func.func @transform_4(%arg0: i32) -> (i32, i32) {
    %c0_i32 = arith.constant 0 : i32
    %c0_i32_0 = arith.constant 0 : i32
    %c0_i32_1 = arith.constant 0 : i32
    return %c0_i32, %c0_i32_0 : i32, i32
  }
  func.func @transform_5(%arg0: i32) -> (i32, i32) {
    %c0_i32 = arith.constant 0 : i32
    %c0_i32_0 = arith.constant 0 : i32
    %c0_i32_1 = arith.constant 0 : i32
    return %c0_i32, %c0_i32_0 : i32, i32
  }
  func.func @transform_6(%arg0: i32) -> (i32, i32) {
    %c0_i32 = arith.constant 0 : i32
    %c0_i32_0 = arith.constant 0 : i32
    %c0_i32_1 = arith.constant 0 : i32
    return %c0_i32, %c0_i32_0 : i32, i32
  }
  func.func @transform_7(%arg0: i32) -> (i32, i32) {
    %c0_i32 = arith.constant 0 : i32
    %c0_i32_0 = arith.constant 0 : i32
    %c0_i32_1 = arith.constant 0 : i32
    return %c0_i32, %c0_i32_0 : i32, i32
  }
  func.func @transform_8(%arg0: i32) -> (i32, i32) {
    %c0_i32 = arith.constant 0 : i32
    %c0_i32_0 = arith.constant 0 : i32
    %c0_i32_1 = arith.constant 0 : i32
    return %c0_i32, %c0_i32_0 : i32, i32
  }
  func.func @transform_9(%arg0: i32) -> (i32, i32) {
    %c0_i32 = arith.constant 0 : i32
    %c0_i32_0 = arith.constant 0 : i32
    %c0_i32_1 = arith.constant 0 : i32
    return %c0_i32, %c0_i32_0 : i32, i32
  }
  func.func @transform_10(%arg0: i32) -> (i32, i32) {
    %c0_i32 = arith.constant 0 : i32
    %c0_i32_0 = arith.constant 0 : i32
    %c0_i32_1 = arith.constant 0 : i32
    return %c0_i32, %c0_i32_0 : i32, i32
  }
  func.func @transform_11(%arg0: i32) -> (i32, i32) {
    %c0_i32 = arith.constant 0 : i32
    %c0_i32_0 = arith.constant 0 : i32
    %c0_i32_1 = arith.constant 0 : i32
    return %c0_i32, %c0_i32_0 : i32, i32
  }
  func.func @transform_12(%arg0: i32) -> (i32, i32) {
    %c0_i32 = arith.constant 0 : i32
    %c0_i32_0 = arith.constant 0 : i32
    return %arg0, %c0_i32 : i32, i32
  }
  func.func @transform_13(%arg0: i32) -> (i32, i32) {
    %c0_i32 = arith.constant 0 : i32
    %c0_i32_0 = arith.constant 0 : i32
    return %arg0, %c0_i32 : i32, i32
  }
  func.func @transform_14(%arg0: i32) -> (i32, i32) {
    %c0_i32 = arith.constant 0 : i32
    %c0_i32_0 = arith.constant 0 : i32
    return %arg0, %c0_i32 : i32, i32
  }
}

</mosaic_0001>

<bundles_post_ra>
// kernel: tpu_custom_call.1
= control target key start
LH: loop header
LB: loop body
LE: loop exit
PB: predicated region body
PF: predicated region fallthrough
CT: control target
= control target key end

     0   :  { %21 = vsyncpa [#allocation4], 0  ;;  %s1414_s0 = inlined_call_operand.hbm [shape: bf16[16,128], index: 0, kind: input, shape index: {}]   ;;  %s1415_s1 = inlined_call_operand.hbm [shape: bf16[16,128], index: 1, kind: input, shape index: {}]   ;;  %s1416_s2 = inlined_call_operand.hbm [shape: bf16[128,128], index: 2, kind: input, shape index: {}]   ;;  %s1417_s3 = inlined_call_operand.vmem [shape: f32[1,128], index: 3, kind: input, shape index: {}]   ;;  %s1418_s4 = inlined_call_operand.hbm [shape: bf16[128,128], index: 4, kind: input, shape index: {}]   ;;  %s1419_s5 = inlined_call_operand.vmem [shape: f32[1,128], index: 5, kind: input, shape index: {}]   ;;  %s1420_s6 = inlined_call_operand.hbm [shape: bf16[128,128], index: 6, kind: input, shape index: {}]   ;;  %s1421_s7 = inlined_call_operand.vmem [shape: f32[1,128], index: 7, kind: input, shape index: {}]   ;;  %s1422_s8 = inlined_call_operand.hbm [shape: bf16[128,128], index: 8, kind: input, shape index: {}]   ;;  %s1423_s9 = inlined_call_operand.vmem [shape: f32[1,128], index: 9, kind: input, shape index: {}]   ;;  %s1424_s10 = inlined_call_operand.vmem [shape: f32[1,128], index: 10, kind: input, shape index: {}]   ;;  %s1425_s11 = inlined_call_operand.<no memory space> [shape: f32[1,1], index: 11, kind: input, shape index: {}]   ;;  %s1426_s12 = inlined_call_operand.hbm [shape: f32[16,128], index: 12, kind: output, shape index: {0}]   ;;  %s1427_s13 = inlined_call_operand.hbm [shape: f32[16,128], index: 13, kind: output, shape index: {1}]   ;;  %s1428_s14 = inlined_call_operand.hbm [shape: f32[16,128], index: 14, kind: output, shape index: {2}]  }
   0x1   :  { %22 = vsyncpa [#allocation7], 0 }
   0x2   :  { %23 = vsyncpa [#allocation10], 0 }
   0x3   :  { %24 = vsyncpa [#allocation13], 0 }
   0x4   :  { %25 = vsyncpa [#allocation5], 0 }
   0x5   :  { %26 = vsyncpa [#allocation16], 0  ;;  %s1110_s29 = smov [#allocation6]   ;;  %s1111_s15 = smov [#allocation9]  }
   0x6   :  { %s44_s30 = sshll.u32 %s1110_s29, 4  ;;  %s70_s16 = sshll.u32 %s1111_s15, 4  ;;  %s45_s30 = int_to_ptr.vmem [resolvable:$true] %s44_s30  ;;  %s1200_s16 = int_to_ptr.vmem [resolvable:$true] %s70_s16 }
   0x7   :  { %s900_s19 = scalar_lea.hbm %s1415_s1, 128 }
   0x8   :  { %p901_p0 = scmp.ne.s32.totalorder %s1415_s1, %s900_s19  ;;  %p904_p1 = scmp.lt.u32.totalorder %s900_s19, %s1415_s1 }
   0xa   :  { %p906_p2 = pnand %p904_p1, %p901_p0 }
   0xc   :  { %909 = shalt.err (!%p906_p2)
}
   0xd   :  { %s910_s24 = scalar_lea.vmem %s45_s30, 128  ;;  %p915_p4 = scmp.lt.s32.totalorder %s45_s30, %s45_s30 }
   0xe   :  { %p911_p3 = scmp.ne.s32.totalorder %s45_s30, %s910_s24  ;;  %p916_p5 = scmp.lt.s32.totalorder %s910_s24, %s910_s24 }
  0x10   :  { %p917_p6 = por %p916_p5, %p915_p4 }
  0x12   :  { %p918_p7 = pnand %p917_p6, %p911_p3 }
  0x14   :  { %921 = shalt.err (!%p918_p7)
}
  0x15   :  { %s1112_s25 = smov 64   ;;  %s1113_s26 = smov 4  }
  0x16   :  { %50 = dma.hbm_to_vmem [thread:$0]  %s1415_s1, 128, %s45_s30, [#allocation7], %s1112_s25, %s1112_s25, %s1113_s26  }
  0x17   :  { %s922_s17 = scalar_lea.hbm %s1418_s4, 1024 }
  0x18   :  { %p923_p8 = scmp.ne.s32.totalorder %s1418_s4, %s922_s17  ;;  %p926_p9 = scmp.lt.u32.totalorder %s922_s17, %s1418_s4 }
  0x1a   :  { %p928_p10 = pnand %p926_p9, %p923_p8 }
  0x1c   :  { %931 = shalt.err (!%p928_p10)
}
  0x1d   :  { %s932_s22 = scalar_lea.vmem %s1200_s16, 1024  ;;  %p937_p12 = scmp.lt.s32.totalorder %s1200_s16, %s1200_s16 }
  0x1e   :  { %p933_p11 = scmp.ne.s32.totalorder %s1200_s16, %s932_s22  ;;  %p938_p13 = scmp.lt.s32.totalorder %s932_s22, %s932_s22 }
  0x20   :  { %p939_p0 = por %p938_p13, %p937_p12 }
  0x22   :  { %p940_p1 = pnand %p939_p0, %p933_p11 }
  0x24   :  { %943 = shalt.err (!%p940_p1)
}
  0x25   :  { %76 = dma.hbm_to_vmem [thread:$0]  %s1418_s4, 1024, %s1200_s16, [#allocation10], %s1112_s25, %s1112_s25, %s1113_s26  }
  0x26   :  { %s1114_s23 = smov [#allocation3]   ;;  %s1115_s27 = smov [#allocation8]  }
  0x27   :  { %s32_s24 = sshll.u32 %s1114_s23, 4  ;;  %s56_s28 = sshll.u32 %s1115_s27, 4  ;;  %s33_s24 = int_to_ptr.vmem [resolvable:$true] %s32_s24  ;;  %s1237_s28 = int_to_ptr.vmem [resolvable:$true] %s56_s28 }
  0x28   :  { %s944_s17 = scalar_lea.hbm %s1414_s0, 128 }
  0x29   :  { %p945_p2 = scmp.ne.s32.totalorder %s1414_s0, %s944_s17  ;;  %p948_p3 = scmp.lt.u32.totalorder %s944_s17, %s1414_s0 }
  0x2b   :  { %p950_p4 = pnand %p948_p3, %p945_p2 }
  0x2d   :  { %953 = shalt.err (!%p950_p4)
}
  0x2e   :  { %s954_s4 = scalar_lea.vmem %s33_s24, 128  ;;  %p959_p6 = scmp.lt.s32.totalorder %s33_s24, %s33_s24 }
  0x2f   :  { %p955_p5 = scmp.ne.s32.totalorder %s33_s24, %s954_s4  ;;  %p960_p7 = scmp.lt.s32.totalorder %s954_s4, %s954_s4 }
  0x31   :  { %p961_p8 = por %p960_p7, %p959_p6 }
  0x33   :  { %p962_p9 = pnand %p961_p8, %p955_p5 }
  0x35   :  { %965 = shalt.err (!%p962_p9)
}
  0x36   :  { %38 = dma.hbm_to_vmem [thread:$0]  %s1414_s0, 128, %s33_s24, [#allocation4], %s1112_s25, %s1112_s25, %s1113_s26  }
  0x37   :  { %s966_s23 = scalar_lea.hbm %s1416_s2, 1024 }
  0x38   :  { %p967_p10 = scmp.ne.s32.totalorder %s1416_s2, %s966_s23  ;;  %p970_p11 = scmp.lt.u32.totalorder %s966_s23, %s1416_s2 }
  0x3a   :  { %p972_p12 = pnand %p970_p11, %p967_p10 }
  0x3c   :  { %975 = shalt.err (!%p972_p12)
}
  0x3d   :  { %s976_s18 = scalar_lea.vmem %s1237_s28, 1024  ;;  %p981_p0 = scmp.lt.s32.totalorder %s1237_s28, %s1237_s28 }
  0x3e   :  { %p977_p13 = scmp.ne.s32.totalorder %s1237_s28, %s976_s18  ;;  %p982_p1 = scmp.lt.s32.totalorder %s976_s18, %s976_s18 }
  0x40   :  { %p983_p2 = por %p982_p1, %p981_p0 }
  0x42   :  { %p984_p3 = pnand %p983_p2, %p977_p13 }
  0x44   :  { %987 = shalt.err (!%p984_p3)
}
  0x45   :  { %62 = dma.hbm_to_vmem [thread:$0]  %s1416_s2, 1024, %s1237_s28, [#allocation7], %s1112_s25, %s1112_s25, %s1113_s26  }
  0x46   :  { %s1116_s19 = smov [#allocation11]   ;;  %s1117_s21 = smov [#allocation12]  }
  0x47   :  { %s84_s20 = sshll.u32 %s1116_s19, 4  ;;  %s98_s4 = sshll.u32 %s1117_s21, 4  ;;  %s85_s20 = int_to_ptr.vmem [resolvable:$true] %s84_s20  ;;  %s1274_s4 = int_to_ptr.vmem [resolvable:$true] %s98_s4 }
  0x48   :  { %s988_s1 = scalar_lea.hbm %s1420_s6, 1024 }
  0x49   :  { %p989_p4 = scmp.ne.s32.totalorder %s1420_s6, %s988_s1  ;;  %p992_p5 = scmp.lt.u32.totalorder %s988_s1, %s1420_s6 }
  0x4b   :  { %p994_p6 = pnand %p992_p5, %p989_p4 }
  0x4d   :  { %997 = shalt.err (!%p994_p6)
}
  0x4e   :  { %s998_s2 = scalar_lea.vmem %s85_s20, 1024  ;;  %p1003_p8 = scmp.lt.s32.totalorder %s85_s20, %s85_s20 }
  0x4f   :  { %p999_p7 = scmp.ne.s32.totalorder %s85_s20, %s998_s2  ;;  %p1004_p9 = scmp.lt.s32.totalorder %s998_s2, %s998_s2 }
  0x51   :  { %p1005_p10 = por %p1004_p9, %p1003_p8 }
  0x53   :  { %p1006_p11 = pnand %p1005_p10, %p999_p7 }
  0x55   :  { %1009 = shalt.err (!%p1006_p11)
}
  0x56   :  { %90 = dma.hbm_to_vmem [thread:$0]  %s1420_s6, 1024, %s85_s20, [#allocation10], %s1112_s25, %s1112_s25, %s1113_s26  }
  0x57   :  { %s1010_s0 = scalar_lea.hbm %s1422_s8, 1024 }
  0x58   :  { %p1011_p12 = scmp.ne.s32.totalorder %s1422_s8, %s1010_s0  ;;  %p1014_p13 = scmp.lt.u32.totalorder %s1010_s0, %s1422_s8 }
  0x5a   :  { %p1016_p0 = pnand %p1014_p13, %p1011_p12 }
  0x5c   :  { %1019 = shalt.err (!%p1016_p0)
}
  0x5d   :  { %s1020_s22 = scalar_lea.vmem %s1274_s4, 1024  ;;  %p1025_p2 = scmp.lt.s32.totalorder %s1274_s4, %s1274_s4 }
  0x5e   :  { %p1021_p1 = scmp.ne.s32.totalorder %s1274_s4, %s1020_s22  ;;  %p1026_p3 = scmp.lt.s32.totalorder %s1020_s22, %s1020_s22 }
  0x60   :  { %p1027_p4 = por %p1026_p3, %p1025_p2 }
  0x62   :  { %p1028_p5 = pnand %p1027_p4, %p1021_p1 }
  0x64   :  { %1031 = shalt.err (!%p1028_p5)
}
  0x65   :  { %104 = dma.hbm_to_vmem [thread:$0]  %s1422_s8, 1024, %s1274_s4, [#allocation13], %s1112_s25, %s1112_s25, %s1113_s26  }
  0x66   :  { %1098 = dma.done.wait [#allocation4], 128  }
  0x67   :  { %1099 = vsyncadd [#allocation4], 4294967168 }
  0x68   :  { %1100 = dma.done.wait [#allocation7], 1152  }
  0x69   :  { %1101 = vsyncadd [#allocation7], 4294966144 }
  0x6a   :  { %1102 = dma.done.wait [#allocation10], 2048  }
  0x6b   :  { %1103 = vsyncadd [#allocation10], 4294965248 }
  0x6c   :  { %1104 = dma.done.wait [#allocation13], 1024  }
  0x6d   :  { %1105 = vsyncadd [#allocation13], 4294966272  ;;  %v1118_v0 = vmov 0.0   ;;  %vm1119_vm0 = vmmov 0   ;;  %v858_v1 = vld [vmem:[#allocation9] sm:$0xff]   ;;  %v859_v2 = vld [vmem:[#allocation9 + $0x8] sm:$0xff]  }
  0x6e   :  { %783 = vmatprep.subr.bf16.mxu1 %v1118_v0  ;;  %799 = vmatprep.mubr.msk.bf16.mxu1 %vm1119_vm0, %v1118_v0  ;;  %v860_v3 = vld [vmem:[#allocation9 + $0x10] sm:$0xff]   ;;  %v867_v4 = vld [vmem:[#allocation8] sm:$0xff]   ;;  %v861_v5 = vld [vmem:[#allocation9 + $0x18] sm:$0xff]   ;;  %s1120_s27 = smov [#allocation15]  }
  0x6f   :  { %763 = vmatprep.subr.bf16.mxu0 %v1118_v0  ;;  %779 = vmatprep.mubr.msk.bf16.mxu0 %vm1119_vm0, %v1118_v0  ;;  %v868_v6 = vld [vmem:[#allocation8 + $0x8] sm:$0xff]   ;;  %v862_v7 = vld [vmem:[#allocation9 + $0x20] sm:$0xff]   ;;  %v869_v8 = vld [vmem:[#allocation8 + $0x10] sm:$0xff]   ;;  %s652_s29 = sshll.u32 %s1120_s27, 4  ;;  %s653_s29 = int_to_ptr.vmem [resolvable:$true] %s652_s29 }
  0x70   :  { %784 = vmatpush3.bf16.msra.mxu1 %v858_v1  ;;  %764 = vmatpush3.bf16.msra.mxu0 %v867_v4  ;;  %v863_v9 = vld [vmem:[#allocation9 + $0x28] sm:$0xff]   ;;  %v870_v10 = vld [vmem:[#allocation8 + $0x18] sm:$0xff]   ;;  %v864_v11 = vld [vmem:[#allocation9 + $0x30] sm:$0xff]   ;;  %s1032_s28 = scalar_lea.vmem %s653_s29, 256  ;;  %p1037_p7 = scmp.lt.s32.totalorder %s653_s29, %s653_s29 }
  0x71   :  { %785 = vmatprep.subr.bf16.mxu1 %v1118_v0  ;;  %765 = vmatprep.subr.bf16.mxu0 %v1118_v0  ;;  %v871_v12 = vld [vmem:[#allocation8 + $0x20] sm:$0xff]   ;;  %v865_v13 = vld [vmem:[#allocation9 + $0x38] sm:$0xff]   ;;  %v872_v14 = vld [vmem:[#allocation8 + $0x28] sm:$0xff]   ;;  %p1033_p6 = scmp.ne.s32.totalorder %s653_s29, %s1032_s28  ;;  %p1038_p8 = scmp.lt.s32.totalorder %s1032_s28, %s1032_s28 }
  0x72   :  { %v866_v15 = vld [vmem:[#allocation6] sm:$0xff]   ;;  %v873_v16 = vld [vmem:[#allocation8 + $0x30] sm:$0xff]   ;;  %v876_v19 = vld [vmem:[#allocation11] sm:$0xff]  }
  0x73   :  { %v874_v17 = vld [vmem:[#allocation8 + $0x38] sm:$0xff]   ;;  %v875_v18 = vld [vmem:[#allocation3] sm:$0xff]   ;;  %v877_v20 = vld [vmem:[#allocation11 + $0x8] sm:$0xff]   ;;  %p1039_p9 = por %p1038_p8, %p1037_p7 }
  0x74   :  { %786 = vmatpush3.bf16.msra.mxu1 %v859_v2  ;;  %766 = vmatpush3.bf16.msra.mxu0 %v868_v6  ;;  %v878_v21 = vld [vmem:[#allocation11 + $0x10] sm:$0xff]   ;;  %v879_v22 = vld [vmem:[#allocation11 + $0x18] sm:$0xff]   ;;  %v880_v23 = vld [vmem:[#allocation11 + $0x20] sm:$0xff]  }
  0x75   :  { %787 = vmatprep.subr.bf16.mxu1 %v1118_v0  ;;  %767 = vmatprep.subr.bf16.mxu0 %v1118_v0  ;;  %v881_v24 = vld [vmem:[#allocation11 + $0x28] sm:$0xff]   ;;  %v882_v25 = vld [vmem:[#allocation11 + $0x30] sm:$0xff]   ;;  %v883_v26 = vld [vmem:[#allocation11 + $0x38] sm:$0xff]   ;;  %p1040_p10 = pnand %p1039_p9, %p1033_p6 }
  0x76   :  { %v884_v27 = vld [vmem:[#allocation12] sm:$0xff]   ;;  %v885_v28 = vld [vmem:[#allocation12 + $0x8] sm:$0xff]   ;;  %v886_v29 = vld [vmem:[#allocation12 + $0x10] sm:$0xff]  }
  0x77   :  { %v887_v30 = vld [vmem:[#allocation12 + $0x18] sm:$0xff]   ;;  %v888_v31 = vld [vmem:[#allocation12 + $0x20] sm:$0xff]   ;;  %v889_v32 = vld [vmem:[#allocation12 + $0x28] sm:$0xff]  }
  0x78   :  { %788 = vmatpush3.bf16.msra.mxu1 %v860_v3  ;;  %768 = vmatpush3.bf16.msra.mxu0 %v869_v8  ;;  %v696_v33 = vld [vmem:[%s1419_s5] ss:$0 sm:$0xff]  ;;  %v891_v51 = vld [vmem:[#allocation12 + $0x38] sm:$0xff]  }
  0x79   :  { %789 = vmatprep.subr.bf16.mxu1 %v1118_v0  ;;  %769 = vmatprep.subr.bf16.mxu0 %v1118_v0  ;;  %v686_v43 = vld [vmem:[%s1417_s3] ss:$0 sm:$0xff] }
  0x7a   :  { %v890_v50 = vld [vmem:[#allocation12 + $0x30] sm:$0xff]  }
  0x7b   :  { %v706_v52 = vld [vmem:[%s1421_s7] ss:$0 sm:$0xff] }
  0x7c   :  { %790 = vmatpush3.bf16.msra.mxu1 %v861_v5  ;;  %770 = vmatpush3.bf16.msra.mxu0 %v870_v10  ;;  %v715_v60 = vld [vmem:[%s1423_s9] ss:$0 sm:$0xff]  ;;  %s1121_s9 = smov [#allocation14]  }
  0x7d   :  { %791 = vmatprep.subr.bf16.mxu1 %v1118_v0  ;;  %771 = vmatprep.subr.bf16.mxu0 %v1118_v0  ;;  %v724_v1 = vld [vmem:[%s1424_s10] ss:$0 sm:$0xff]  ;;  %s640_s2 = sshll.u32 %s1121_s9, 4  ;;  %s641_s2 = int_to_ptr.vmem [resolvable:$true] %s640_s2 }
  0x80   :  { %792 = vmatpush3.bf16.msra.mxu1 %v862_v7  ;;  %772 = vmatpush3.bf16.msra.mxu0 %v871_v12 }
  0x81   :  { %793 = vmatprep.subr.bf16.mxu1 %v1118_v0  ;;  %773 = vmatprep.subr.bf16.mxu0 %v1118_v0 }
  0x84   :  { %794 = vmatpush3.bf16.msra.mxu1 %v863_v9  ;;  %774 = vmatpush3.bf16.msra.mxu0 %v872_v14 }
  0x85   :  { %795 = vmatprep.subr.bf16.mxu1 %v1118_v0  ;;  %775 = vmatprep.subr.bf16.mxu0 %v1118_v0 }
  0x88   :  { %796 = vmatpush3.bf16.msra.mxu1 %v864_v11  ;;  %776 = vmatpush3.bf16.msra.mxu0 %v873_v16 }
  0x89   :  { %797 = vmatprep.subr.bf16.mxu1 %v1118_v0  ;;  %777 = vmatprep.subr.bf16.mxu0 %v1118_v0 }
  0x8c   :  { %798 = vmatpush3.bf16.msra.mxu1 %v865_v13  ;;  %778 = vmatpush3.bf16.msra.mxu0 %v874_v17 }
  0x8d   :  { %823 = vmatprep.subr.bf16.mxu1 %v1118_v0  ;;  %803 = vmatprep.subr.bf16.mxu0 %v1118_v0 }
  0x8f   :  { %800 = vmatmul.mubr.bf16.vlgmr.msra.gmra.mrb[0].mxu1 %v866_v15  ;;  %780 = vmatmul.mubr.bf16.vlgmr.msra.gmra.mrb[0].mxu0 %v875_v18 }
  0x90   :  { %839 = vmatprep.mubr.msk.bf16.mxu1 %vm1119_vm0, %v1118_v0  ;;  %804 = vmatpush3.bf16.msra.mxu0 %v876_v19 }
  0x91   :  { %819 = vmatprep.mubr.msk.bf16.mxu0 %vm1119_vm0, %v1118_v0  ;;  %805 = vmatprep.subr.bf16.mxu0 %v1118_v0 }
  0x92   :  { %824 = vmatpush3.bf16.msra.mxu1 %v884_v27 }
  0x93   :  { %825 = vmatprep.subr.bf16.mxu1 %v1118_v0 }
  0x94   :  { %806 = vmatpush3.bf16.msra.mxu0 %v877_v20 }
  0x95   :  { %807 = vmatprep.subr.bf16.mxu0 %v1118_v0 }
  0x96   :  { %826 = vmatpush3.bf16.msra.mxu1 %v885_v28 }
  0x97   :  { %827 = vmatprep.subr.bf16.mxu1 %v1118_v0 }
  0x98   :  { %808 = vmatpush3.bf16.msra.mxu0 %v878_v21 }
  0x99   :  { %809 = vmatprep.subr.bf16.mxu0 %v1118_v0 }
  0x9a   :  { %828 = vmatpush3.bf16.msra.mxu1 %v886_v29 }
  0x9b   :  { %829 = vmatprep.subr.bf16.mxu1 %v1118_v0 }
  0x9c   :  { %810 = vmatpush3.bf16.msra.mxu0 %v879_v22 }
  0x9d   :  { %811 = vmatprep.subr.bf16.mxu0 %v1118_v0 }
  0x9e   :  { %830 = vmatpush3.bf16.msra.mxu1 %v887_v30 }
  0x9f   :  { %831 = vmatprep.subr.bf16.mxu1 %v1118_v0 }
  0xa0   :  { %812 = vmatpush3.bf16.msra.mxu0 %v880_v23 }
  0xa1   :  { %813 = vmatprep.subr.bf16.mxu0 %v1118_v0 }
  0xa2   :  { %832 = vmatpush3.bf16.msra.mxu1 %v888_v31 }
  0xa3   :  { %833 = vmatprep.subr.bf16.mxu1 %v1118_v0 }
  0xa4   :  { %814 = vmatpush3.bf16.msra.mxu0 %v881_v24 }
  0xa5   :  { %815 = vmatprep.subr.bf16.mxu0 %v1118_v0 }
  0xa6   :  { %834 = vmatpush3.bf16.msra.mxu1 %v889_v32 }
  0xa7   :  { %835 = vmatprep.subr.bf16.mxu1 %v1118_v0 }
  0xa8   :  { %816 = vmatpush3.bf16.msra.mxu0 %v882_v25 }
  0xa9   :  { %817 = vmatprep.subr.bf16.mxu0 %v1118_v0 }
  0xaa   :  { %836 = vmatpush3.bf16.msra.mxu1 %v890_v50 }
  0xab   :  { %837 = vmatprep.subr.bf16.mxu1 %v1118_v0 }
  0xac   :  { %818 = vmatpush3.bf16.msra.mxu0 %v883_v26 }
  0xae   :  { %838 = vmatpush3.bf16.msra.mxu1 %v891_v51 }
 0x162   :  { %v365_v34 = vpop.f32.mrb[0].mxu1  ;;  %v243_v44 = vpop.f32.mrb[0].mxu0 }
 0x163   :  { %v366_v35 = vadd.f32 %v696_v33, %v365_v34  ;;  %v801_v36 = vpop.f32.mrb[1].mxu1  ;;  %v244_v45 = vadd.f32 %v686_v43, %v243_v44  ;;  %v781_v46 = vpop.f32.mrb[1].mxu0 }
 0x164   :  { %v368_v37 = vpop.f32.mrb[2].mxu1  ;;  %v246_v47 = vpop.f32.mrb[2].mxu0 }
 0x165   :  { %v369_v38 = vadd.f32 %v696_v33, %v368_v37  ;;  %v802_v39 = vpop.f32.mrb[3].mxu1  ;;  %v372_v40 = vmax.f32 %v366_v35, 0.0  ;;  %250 = vst [vmem:[#allocation14] sm:$0xff] %v244_v45  ;;  %v247_v48 = vadd.f32 %v686_v43, %v246_v47  ;;  %v782_v49 = vpop.f32.mrb[3].mxu0 }
 0x167   :  { %v373_v41 = vmax.f32 %v369_v38, 0.0  ;;  %251 = vst [vmem:[#allocation14 + $0x8] sm:$0xff] %v247_v48 }
 0x169   :  { %v374_v42 = vpack.c.bf16 %v373_v41, %v372_v40 }
 0x16b   :  { %820 = vmatmul.mubr.bf16.vlgmr.msra.gmra.mrb[4].mxu0 %v374_v42 }
 0x23e   :  { %v480_v53 = vpop.f32.mrb[4].mxu0 }
 0x23f   :  { %v481_v54 = vadd.f32 %v706_v52, %v480_v53  ;;  %v821_v55 = vpop.f32.mrb[5].mxu0 }
 0x240   :  { %v483_v56 = vpop.f32.mrb[6].mxu0 }
 0x241   :  { %487 = vst [vmem:[#allocation15] sm:$0xff] %v481_v54  ;;  %v484_v57 = vadd.f32 %v706_v52, %v483_v56  ;;  %v822_v58 = vpop.f32.mrb[7].mxu0 }
 0x243   :  { %488 = vst [vmem:[#allocation15 + $0x8] sm:$0xff] %v484_v57  ;;  %v489_v59 = vpack.c.bf16 %v484_v57, %v481_v54 }
 0x245   :  { %840 = vmatmul.mubr.bf16.vlgmr.msra.gmra.mrb[4].mxu1 %v489_v59 }
 0x318   :  { %v595_v61 = vpop.f32.mrb[4].mxu1 }
 0x319   :  { %v596_v62 = vadd.f32 %v715_v60, %v595_v61  ;;  %v841_v63 = vpop.f32.mrb[5].mxu1 }
 0x31a   :  { %v598_v0 = vpop.f32.mrb[6].mxu1 }
 0x31b   :  { %v602_v2 = vmax.f32 %v596_v62, 0.0  ;;  %v599_v3 = vadd.f32 %v715_v60, %v598_v0  ;;  %v842_v4 = vpop.f32.mrb[7].mxu1 }
 0x31d   :  { %v603_v5 = vmax.f32 %v599_v3, 0.0  ;;  %v611_v6 = vmul.f32 %v724_v1, %v602_v2 }
 0x31f   :  { %613 = vadd.xlane.f32.xlu0 %v611_v6  ;;  %v612_v7 = vmul.f32 %v724_v1, %v603_v5 }
 0x323   :  { %615 = vadd.xlane.f32.xlu0 %v612_v7 }
 0x324   :  { %1043 = shalt.err (!%p1040_p10)
}
 0x325   :  { %s1044_s17 = scalar_lea.hbm %s1427_s13, 256 }
 0x326   :  { %p1045_p11 = scmp.ne.s32.totalorder %s1427_s13, %s1044_s17  ;;  %p1048_p12 = scmp.lt.u32.totalorder %s1044_s17, %s1427_s13 }
 0x328   :  { %p1050_p13 = pnand %p1048_p12, %p1045_p11 }
 0x32a   :  { %1053 = shalt.err (!%p1050_p13)
}
 0x32b   :  { %s1122_s21 = smov 128   ;;  %s1123_s16 = smov 8  }
 0x32c   :  { %658 = dma.vmem_to_hbm [thread:$0]  %s653_s29, 256, %s1427_s13, [#allocation16], %s1122_s21, %s1122_s21, %s1123_s16  }
 0x32d   :  { %s1054_s20 = scalar_lea.vmem %s641_s2, 256  ;;  %p1059_p1 = scmp.lt.s32.totalorder %s641_s2, %s641_s2 }
 0x32e   :  { %p1055_p0 = scmp.ne.s32.totalorder %s641_s2, %s1054_s20  ;;  %p1060_p2 = scmp.lt.s32.totalorder %s1054_s20, %s1054_s20 }
 0x330   :  { %p1061_p3 = por %p1060_p2, %p1059_p1 }
 0x332   :  { %p1062_p4 = pnand %p1061_p3, %p1055_p0 }
 0x334   :  { %1065 = shalt.err (!%p1062_p4)
}
 0x335   :  { %s1066_s26 = scalar_lea.hbm %s1426_s12, 256 }
 0x336   :  { %p1067_p5 = scmp.ne.s32.totalorder %s1426_s12, %s1066_s26  ;;  %p1070_p6 = scmp.lt.u32.totalorder %s1066_s26, %s1426_s12 }
 0x338   :  { %p1072_p7 = pnand %p1070_p6, %p1067_p5 }
 0x33a   :  { %1075 = shalt.err (!%p1072_p7)
}
 0x33b   :  { %646 = dma.vmem_to_hbm [thread:$0]  %s641_s2, 256, %s1426_s12, [#allocation5], %s1122_s21, %s1122_s21, %s1123_s16  }
 0x33c   :  { %v618_v8 = vstv %s1425_s11  ;;  %s1124_s12 = smov [#allocation17]  }
 0x33d   :  { %s664_s27 = sshll.u32 %s1124_s12, 4  ;;  %s665_s27 = int_to_ptr.vmem [resolvable:$true] %s664_s27 }
 0x33e   :  { %s1076_s11 = scalar_lea.vmem %s665_s27, 256  ;;  %p1081_p9 = scmp.lt.s32.totalorder %s665_s27, %s665_s27 }
 0x33f   :  { %p1077_p8 = scmp.ne.s32.totalorder %s665_s27, %s1076_s11  ;;  %p1082_p10 = scmp.lt.s32.totalorder %s1076_s11, %s1076_s11 }
 0x341   :  { %p1083_p11 = por %p1082_p10, %p1081_p9 }
 0x343   :  { %p1084_p12 = pnand %p1083_p11, %p1077_p8 }
 0x3ac   :  { %v614_v9 = vpop.xlane.xlu0 %613 }
 0x3ad   :  { %v619_v10 = vadd.f32 %v618_v8, %v614_v9 }
 0x3af   :  { %v725_v11 = vmul.f32 -1.442695, %v619_v10 }
 0x3b0   :  { %v616_v12 = vpop.xlane.xlu0 %615 }
 0x3b1   :  { %892 = vpow2.f32 %v725_v11  ;;  %v620_v13 = vadd.f32 %v618_v8, %v616_v12 }
 0x3b3   :  { %v726_v14 = vmul.f32 -1.442695, %v620_v13 }
 0x3b5   :  { %894 = vpow2.f32 %v726_v14 }
 0x3bb   :  { %v893_v15 = vpop.eup %892 }
 0x3bc   :  { %v627_v16 = vadd.f32 1.0, %v893_v15 }
 0x3be   :  { %896 = vrcp.f32 %v627_v16 }
 0x3bf   :  { %v895_v17 = vpop.eup %894 }
 0x3c0   :  { %v628_v18 = vadd.f32 1.0, %v895_v17 }
 0x3c2   :  { %898 = vrcp.f32 %v628_v18 }
 0x3c8   :  { %v897_v19 = vpop.eup %896 }
 0x3c9   :  { %633 = vst [vmem:[#allocation17] sm:$0xff] %v897_v19 }
 0x3cc   :  { %v899_v20 = vpop.eup %898 }
 0x3cd   :  { %634 = vst [vmem:[#allocation17 + $0x8] sm:$0xff] %v899_v20 }
 0x3ce   :  { %1087 = shalt.err (!%p1084_p12)
}
 0x3cf   :  { %s1088_s2 = scalar_lea.hbm %s1428_s14, 256 }
 0x3d0   :  { %p1089_p13 = scmp.ne.s32.totalorder %s1428_s14, %s1088_s2  ;;  %p1092_p0 = scmp.lt.u32.totalorder %s1088_s2, %s1428_s14 }
 0x3d2   :  { %p1094_p1 = pnand %p1092_p0, %p1089_p13 }
 0x3d4   :  { %1097 = shalt.err (!%p1094_p1)
}
 0x3d5   :  { %670 = dma.vmem_to_hbm [thread:$0]  %s665_s27, 256, %s1428_s14, [#allocation16], %s1122_s21, %s1122_s21, %s1123_s16  }
 0x3d6   :  { %1106 = dma.done.wait [#allocation5], 256  }
 0x3d7   :  { %1107 = vsyncadd [#allocation5], 4294967040 }
 0x3d8   :  { %1108 = dma.done.wait [#allocation16], 512  }
 0x3d9   :  { %1109 = vsyncadd [#allocation16], 4294966784 }
 0x3da   :  { %680 = vsyncpa [#allocation4], 1 }
 0x3db   :  { %681 = vsyncpa [#allocation7], 1 }
 0x3dc   :  { %682 = vsyncpa [#allocation10], 1 }
 0x3dd   :  { %683 = vsyncpa [#allocation13], 1 }
 0x3de   :  { %684 = vsyncpa [#allocation5], 1 }
 0x3df   :  { %685 = vsyncpa [#allocation16], 1 }

</bundles_post_ra>
